<compile_context>
chip_gen: v6e
topology: v6e:2x2x1
jax: 0.10.0
libtpu: 0.0.40
codegen_flags: <defaults>
</compile_context>

<pallas_src>
import functools

import jax
import jax.numpy as jnp
from jax import lax
from jax.experimental import pallas as pl
from jax.experimental.pallas import tpu as pltpu


def _pick_rows(itemsize, batch):
    """Batch rows gathered per group: dtype-aware, multiple of 8, capped by batch."""
    base = 32 if itemsize < 4 else 16
    b8 = ((batch + 7) // 8) * 8
    return max(8, min(base, b8))


def _rnnt_align_distill_kernel(row_idx_ref,      # [b_pad] int32 (SMEM scalar prefetch)
                               w_ref,            # (b_pad, 1) f32   VMEM, resident
                               soft_ref,         # (b_pad, V) f32   VMEM, resident
                               logits_hbm,       # (B*T*U, Vw) HBM  (pl.ANY)
                               out_ref,          # (8, 128) f32 per-chunk partial
                               lbuf, sem, acc,   # scratch
                               *, rows, num_groups, groups_per_chunk, packed):
    chunk = pl.program_id(0)
    g_start = chunk * groups_per_chunk
    g_end = jnp.minimum(g_start + groups_per_chunk, num_groups)

    def issue(group, slot):
        base = group * rows
        for r in range(rows):                    # static unroll: `rows` concurrent DMAs
            src = row_idx_ref[base + r]
            pltpu.make_async_copy(logits_hbm.at[src], lbuf.at[slot, r],
                                  sem.at[slot]).start()

    def wait(slot):
        # Reconstructed descriptors match the started ones in shape/dtype; all row
        # copies of a slot share one semaphore, so `rows` waits cover the group.
        for r in range(rows):
            pltpu.make_async_copy(logits_hbm.at[0], lbuf.at[slot, r],
                                  sem.at[slot]).wait()

    acc[...] = jnp.zeros_like(acc)

    @pl.when(g_start < g_end)
    def _prime():
        issue(g_start, 0)

    @pl.loop(0, g_end - g_start)
    def _group(i):
        g = g_start + i
        slot = i & 1

        @pl.when(g + 1 < g_end)                  # double buffer: prefetch next group
        def _prefetch():
            issue(g + 1, 1 - slot)

        wait(slot)

        base = pl.multiple_of(g * rows, 8)
        soft = soft_ref[pl.ds(base, rows), :]                        # (rows, V) f32
        w_rows = w_ref[pl.ds(base, rows), :]                         # (rows, 1) f32

        if packed:
            # lbuf rows are uint32 words, each carrying two bf16 logits.
            words = lbuf[slot]                                       # (rows, V//2) u32
            lo = pltpu.bitcast(words << 16, jnp.float32)             # low-half  bf16->f32
            hi = pltpu.bitcast(words & jnp.uint32(0xFFFF0000), jnp.float32)  # high half
            vw = lo.shape[-1]
            m = jnp.maximum(jnp.max(lo, axis=-1, keepdims=True),
                            jnp.max(hi, axis=-1, keepdims=True))
            lse = jnp.log(jnp.sum(jnp.exp(lo - m), axis=-1, keepdims=True)
                          + jnp.sum(jnp.exp(hi - m), axis=-1, keepdims=True))
            # soft lanes were permuted in the wrapper to [low-half | high-half] order.
            loss_rows = (
                jnp.sum(soft[:, :vw] * (lo - m - lse), axis=-1, keepdims=True)
                + jnp.sum(soft[:, vw:] * (hi - m - lse), axis=-1, keepdims=True))
        else:
            x = lbuf[slot].astype(jnp.float32)                       # (rows, V)
            m = jnp.max(x, axis=-1, keepdims=True)
            shifted = x - m
            lse = jnp.log(jnp.sum(jnp.exp(shifted), axis=-1, keepdims=True))
            loss_rows = jnp.sum(soft * (shifted - lse), axis=-1, keepdims=True)

        # Weights already carry sign, 1/ylen, 1/B and the padded-row zero mask.
        acc[...] += loss_rows * w_rows           # elementwise; reduce only at the end

    out_ref[...] = jnp.zeros_like(out_ref) + jnp.sum(acc[...])


@functools.partial(jax.jit, static_argnames=("normalize_length", "normalize_batch"))
def rnnt_align_distill_loss(logits, ys, soft_labels, aligns, xlens, ylens,
                            normalize_length=True, normalize_batch=True):
    """Pallas TPU implementation of RNNTAlignDistillLoss.forward.

    logits:      [B, T, U, V] float (f32 native path; bf16 packed-DMA path)
    ys:          unused (kept for signature parity)
    soft_labels: [B, U, V] float
    aligns:      [B, U] int   (time index per label position)
    xlens:       unused (kept for signature parity)
    ylens:       [B] int      (label lengths, must be >= 1)
    returns scalar float32 loss.
    """
    del ys, xlens  # do not affect the reference forward's return value
    B, T, U, V = logits.shape

    aligns_i = aligns.astype(jnp.int32)
    ylens_i = ylens.astype(jnp.int32)

    # (t, u) index actually used per batch element, flattened into a row id of the
    # (B*T*U, V) logits view.
    u_sel = ylens_i - 1                                               # [B]
    t_sel = jnp.take_along_axis(aligns_i, u_sel[:, None], axis=1)[:, 0]
    row_idx = jnp.arange(B, dtype=jnp.int32) * (T * U) + t_sel * U + u_sel

    # Pre-gather the single soft-label row used per batch element (only B*V elems).
    soft_rows = jnp.take_along_axis(
        soft_labels, u_sel[:, None, None], axis=1)[:, 0, :].astype(jnp.float32)

    # --- dtype-aware logits row-gather path ---------------------------------
    packed = bool(logits.dtype == jnp.dtype(jnp.bfloat16)
                  and V % 2 == 0 and V <= 65536)
    if (not packed) and logits.dtype.itemsize < 4:
        # TODO(synk): add packed row-DMA paths for fp16 / int8 / fp8 logits.
        logits = logits.astype(jnp.float32)

    if packed:
        # View each logits row as V//2 uint32 words so every manual row DMA lands
        # on a 32-bit-aligned, fully packed VMEM destination.
        logits_rows = lax.bitcast_convert_type(
            logits.reshape(B * T * U, V // 2, 2), jnp.uint32)         # (B*T*U, V//2)
        buf_dtype, buf_width = jnp.uint32, V // 2
        # Re-order soft-label lanes to [low-half | high-half] so they pair with the
        # kernel's unpacking; the packing convention is derived from a bitcast probe.
        probe = lax.bitcast_convert_type(
            jnp.arange(V, dtype=jnp.uint16).reshape(V // 2, 2), jnp.uint32)
        lo_idx = (probe & jnp.uint32(0xFFFF)).astype(jnp.int32)
        hi_idx = (probe >> 16).astype(jnp.int32)
        soft_rows = soft_rows[:, jnp.concatenate([lo_idx, hi_idx])]
        rows = _pick_rows(2, B)
    else:
        logits_rows = logits.reshape(B * T * U, V)                    # contiguous view
        buf_dtype, buf_width = logits.dtype, V
        rows = _pick_rows(logits.dtype.itemsize, B)

    num_groups = pl.cdiv(B, rows)
    b_pad = num_groups * rows
    pad = b_pad - B
    n_chunks = min(2, num_groups)        # v7x: split groups over the 2 TensorCores
    groups_per_chunk = pl.cdiv(num_groups, n_chunks)

    # Padded rows fetch row 0 (valid address) but carry weight 0 and soft 0.
    row_idx = jnp.pad(row_idx, (0, pad))
    soft_rows = jnp.pad(soft_rows, ((0, pad), (0, 0)))

    # Fold sign, 1/ylen, 1/B and the pad mask into a single per-row weight.
    w = -jnp.ones((B,), jnp.float32)
    if normalize_length:
        w = w / ylens_i.astype(jnp.float32)
    if normalize_batch:
        w = w / jnp.float32(B)
    w_pad = jnp.pad(w, (0, pad)).reshape(b_pad, 1)

    kernel = functools.partial(_rnnt_align_distill_kernel, rows=rows,
                               num_groups=num_groups,
                               groups_per_chunk=groups_per_chunk, packed=packed)

    lane = lambda n: ((n + 127) // 128) * 128
    vmem_need = (2 * b_pad * lane(V) * 4                               # soft rows (f32)
                 + 2 * b_pad * 128 * 4                                 # weights
                 + 2 * rows * lane(buf_width) * jnp.dtype(buf_dtype).itemsize  # lbuf
                 + (2 << 20))                                          # headroom
    vmem_limit = int(min(max(2 * vmem_need, 32 << 20), 64 << 20))

    out = pl.pallas_call(
        kernel,
        out_shape=jax.ShapeDtypeStruct((n_chunks * 8, 128), jnp.float32),
        grid_spec=pltpu.PrefetchScalarGridSpec(
            num_scalar_prefetch=1,                   # row_idx -> SMEM
            grid=(n_chunks,),
            in_specs=[
                pl.BlockSpec((b_pad, 1), lambda c, ridx: (0, 0)),   # weights (resident)
                pl.BlockSpec((b_pad, V), lambda c, ridx: (0, 0)),   # soft rows (resident)
                pl.BlockSpec(memory_space=pl.ANY),                  # logits stay in HBM
            ],
            out_specs=pl.BlockSpec((8, 128), lambda c, ridx: (c, 0)),
            scratch_shapes=[
                pltpu.VMEM((2, rows, buf_width), buf_dtype),        # double-buffered rows
                pltpu.SemaphoreType.DMA((2,)),                      # one sem per slot
                pltpu.VMEM((rows, 1), jnp.float32),                 # per-row accumulator
            ],
        ),
        compiler_params=pltpu.CompilerParams(
            dimension_semantics=("parallel",),
            vmem_limit_bytes=vmem_limit,
        ),
    )(row_idx, w_pad, soft_rows, logits_rows)

    # One partial per core-chunk, broadcast over its (8, 128) output tile.
    return jnp.sum(out[::8, 0])


def _reference(logits, soft_labels, aligns, ylens,
               normalize_length=True, normalize_batch=True):
    """Pure-JAX reproduction of the PyTorch forward (for validation)."""
    B = logits.shape[0]
    loss = jnp.float32(0.0)
    for b in range(B):
        ylen = int(ylens[b])
        u = ylen - 1
        t = int(aligns[b, u])
        log_probs = jax.nn.log_softmax(logits[b, t, u].astype(jnp.float32))
        loss_u = jnp.sum(soft_labels[b, u].astype(jnp.float32) * log_probs)
        if normalize_length:
            loss_u = loss_u / ylen
        loss = loss - loss_u
    if normalize_batch:
        loss = loss / B
    return loss


if __name__ == "__main__":
    def run_case(case_id, B, T, U, V, dtype=jnp.float32,
                 normalize_length=True, normalize_batch=True, tol=1e-4):
        key = jax.random.fold_in(jax.random.PRNGKey(0), case_id)
        k1, k2, k3, k4 = jax.random.split(key, 4)
        logits = jax.random.normal(k1, (B, T, U, V), dtype=jnp.float32).astype(dtype)
        soft_labels = jax.nn.softmax(
            jax.random.normal(k2, (B, U, V), dtype=jnp.float32), axis=-1).astype(dtype)
        aligns = jax.random.randint(k3, (B, U), 0, T, dtype=jnp.int32)
        ylens = jax.random.randint(k4, (B,), 1, U + 1, dtype=jnp.int32)
        ys = jnp.zeros((B, U), dtype=jnp.int32)          # unused by the loss
        xlens = jnp.full((B,), T, dtype=jnp.int32)       # unused by the loss

        loss = rnnt_align_distill_loss(
            logits, ys, soft_labels, aligns, xlens, ylens,
            normalize_length=normalize_length, normalize_batch=normalize_batch)
        loss = jax.block_until_ready(loss)

        ref = _reference(logits, soft_labels, aligns, ylens,
                         normalize_length, normalize_batch)
        assert abs(float(loss) - float(ref)) < tol, (
            case_id, float(loss), float(ref))

    # Small shapes consistent with the module.
    run_case(0, B=2, T=8, U=6, V=128)                     # one group, one chunk
    run_case(1, B=10, T=7, U=5, V=256)                    # padded rows within one group
    run_case(2, B=3, T=4, U=3, V=128,
             normalize_length=False, normalize_batch=False)
    run_case(3, B=40, T=5, U=4, V=128)                    # 3 groups, 2 chunks, dbl-buffer
    run_case(4, B=12, T=6, U=4, V=256, dtype=jnp.bfloat16, tol=2e-3)   # packed bf16 path
    run_case(5, B=40, T=5, U=4, V=256, dtype=jnp.bfloat16, tol=2e-3)   # 32-row packed, 2 chunks

    print("KERNEL_OK")
</pallas_src>

<mosaic_0001>
module attributes {stable_mosaic.version = 11 : i64} {
  func.func @_rnnt_align_distill_kernel(%arg0: i32, %arg1: memref<8xi32, #tpu.memory_space<smem>>, %arg2: memref<8x1xf32, #tpu.memory_space<vmem>>, %arg3: memref<8x128xf32, #tpu.memory_space<vmem>>, %arg4: memref<96x128xf32, #tpu.memory_space<any>>, %arg5: memref<8x128xf32, #tpu.memory_space<vmem>>, %arg6: memref<2x8x128xf32, #tpu.memory_space<vmem>>, %arg7: memref<2x!tpu.dma_semaphore, #tpu.memory_space<semaphore_mem>>, %arg8: memref<8x1xf32, #tpu.memory_space<vmem>>) attributes {dimension_semantics = [#tpu.dimension_semantics<parallel>], iteration_bounds = array<i64: 1>, scalar_prefetch = 1 : i64, scratch_operands = 3 : i64, tpu.core_type = #tpu.core_type<tc>, window_params = [{pipeline_mode = #tpu.pipeline_mode<synchronous>, transform_indices = @transform_0, window_bounds = array<i64: 8, 1>}, {pipeline_mode = #tpu.pipeline_mode<synchronous>, transform_indices = @transform_1, window_bounds = array<i64: 8, 128>}, {}, {transform_indices = @transform_3, window_bounds = array<i64: 8, 128>}]} {
    %c1_i32 = arith.constant 1 : i32
    %0 = arith.muli %arg0, %c1_i32 : i32
    %c1_i32_0 = arith.constant 1 : i32
    %1 = arith.addi %0, %c1_i32_0 : i32
    %c1_i32_1 = arith.constant 1 : i32
    %2 = arith.minsi %1, %c1_i32_1 : i32
    %cst = arith.constant 0.000000e+00 : f32
    %3 = vector.broadcast %cst : f32 to vector<8x1xf32>
    %c0 = arith.constant 0 : index
    %c0_2 = arith.constant 0 : index
    %4 = vector.load %arg8[%c0, %c0_2] : memref<8x1xf32, #tpu.memory_space<vmem>>, vector<8x1xf32>
    tpu.vector_store %arg8[%c0, %c0_2], %3 {strides = array<i32>} : memref<8x1xf32, #tpu.memory_space<vmem>>, vector<8x1xf32>,
    %5 = arith.cmpi slt, %0, %2 : i32
    %6 = arith.extui %5 : i1 to i32
    %c0_i32 = arith.constant 0 : i32
    %7 = arith.cmpi ne, %6, %c0_i32 : i32
    scf.if %7 {
      %c8_i32 = arith.constant 8 : i32
      %24 = arith.muli %0, %c8_i32 : i32
      %c0_i32_17 = arith.constant 0 : i32
      %25 = arith.addi %24, %c0_i32_17 : i32
      %26 = arith.index_cast %25 : i32 to index
      %27 = memref.load %arg1[%26] : memref<8xi32, #tpu.memory_space<smem>>
      %c0_i32_18 = arith.constant 0 : i32
      %c0_i32_19 = arith.constant 0 : i32
      %c0_i32_20 = arith.constant 0 : i32
      %c0_i32_21 = arith.constant 0 : i32
      %28 = tpu.memref_slice %arg4[%27, %c0_i32_21] : memref<96x128xf32, #tpu.memory_space<any>> -> memref<1x128xf32, #tpu.memory_space<any>>
      %29 = tpu.memref_squeeze %28 : memref<1x128xf32, #tpu.memory_space<any>> -> memref<128xf32, #tpu.memory_space<any>>
      %c0_i32_22 = arith.constant 0 : i32
      %30 = tpu.memref_slice %arg6[%c0_i32_18, %c0_i32_19, %c0_i32_22] : memref<2x8x128xf32, #tpu.memory_space<vmem>> -> memref<1x1x128xf32, #tpu.memory_space<vmem>>
      %31 = tpu.memref_squeeze %30 : memref<1x1x128xf32, #tpu.memory_space<vmem>> -> memref<128xf32, #tpu.memory_space<vmem>>
      %32 = tpu.memref_slice %arg7[%c0_i32_20] : memref<2x!tpu.dma_semaphore, #tpu.memory_space<semaphore_mem>> -> memref<1x!tpu.dma_semaphore, #tpu.memory_space<semaphore_mem>>
      %33 = tpu.memref_squeeze %32 : memref<1x!tpu.dma_semaphore, #tpu.memory_space<semaphore_mem>> -> memref<!tpu.dma_semaphore, #tpu.memory_space<semaphore_mem>>
      tpu.enqueue_dma source(%29 : memref<128xf32, #tpu.memory_space<any>>) target(%31 : memref<128xf32, #tpu.memory_space<vmem>>) target_semaphore(%33 : memref<!tpu.dma_semaphore, #tpu.memory_space<semaphore_mem>>)
      %c1_i32_23 = arith.constant 1 : i32
      %34 = arith.addi %24, %c1_i32_23 : i32
      %35 = arith.index_cast %34 : i32 to index
      %36 = memref.load %arg1[%35] : memref<8xi32, #tpu.memory_space<smem>>
      %c0_i32_24 = arith.constant 0 : i32
      %c1_i32_25 = arith.constant 1 : i32
      %c0_i32_26 = arith.constant 0 : i32
      %c0_i32_27 = arith.constant 0 : i32
      %37 = tpu.memref_slice %arg4[%36, %c0_i32_27] : memref<96x128xf32, #tpu.memory_space<any>> -> memref<1x128xf32, #tpu.memory_space<any>>
      %38 = tpu.memref_squeeze %37 : memref<1x128xf32, #tpu.memory_space<any>> -> memref<128xf32, #tpu.memory_space<any>>
      %c0_i32_28 = arith.constant 0 : i32
      %39 = tpu.memref_slice %arg6[%c0_i32_24, %c1_i32_25, %c0_i32_28] : memref<2x8x128xf32, #tpu.memory_space<vmem>> -> memref<1x1x128xf32, #tpu.memory_space<vmem>>
      %40 = tpu.memref_squeeze %39 : memref<1x1x128xf32, #tpu.memory_space<vmem>> -> memref<128xf32, #tpu.memory_space<vmem>>
      %41 = tpu.memref_slice %arg7[%c0_i32_26] : memref<2x!tpu.dma_semaphore, #tpu.memory_space<semaphore_mem>> -> memref<1x!tpu.dma_semaphore, #tpu.memory_space<semaphore_mem>>
      %42 = tpu.memref_squeeze %41 : memref<1x!tpu.dma_semaphore, #tpu.memory_space<semaphore_mem>> -> memref<!tpu.dma_semaphore, #tpu.memory_space<semaphore_mem>>
      tpu.enqueue_dma source(%38 : memref<128xf32, #tpu.memory_space<any>>) target(%40 : memref<128xf32, #tpu.memory_space<vmem>>) target_semaphore(%42 : memref<!tpu.dma_semaphore, #tpu.memory_space<semaphore_mem>>)
      %c2_i32 = arith.constant 2 : i32
      %43 = arith.addi %24, %c2_i32 : i32
      %44 = arith.index_cast %43 : i32 to index
      %45 = memref.load %arg1[%44] : memref<8xi32, #tpu.memory_space<smem>>
      %c0_i32_29 = arith.constant 0 : i32
      %c2_i32_30 = arith.constant 2 : i32
      %c0_i32_31 = arith.constant 0 : i32
      %c0_i32_32 = arith.constant 0 : i32
      %46 = tpu.memref_slice %arg4[%45, %c0_i32_32] : memref<96x128xf32, #tpu.memory_space<any>> -> memref<1x128xf32, #tpu.memory_space<any>>
      %47 = tpu.memref_squeeze %46 : memref<1x128xf32, #tpu.memory_space<any>> -> memref<128xf32, #tpu.memory_space<any>>
      %c0_i32_33 = arith.constant 0 : i32
      %48 = tpu.memref_slice %arg6[%c0_i32_29, %c2_i32_30, %c0_i32_33] : memref<2x8x128xf32, #tpu.memory_space<vmem>> -> memref<1x1x128xf32, #tpu.memory_space<vmem>>
      %49 = tpu.memref_squeeze %48 : memref<1x1x128xf32, #tpu.memory_space<vmem>> -> memref<128xf32, #tpu.memory_space<vmem>>
      %50 = tpu.memref_slice %arg7[%c0_i32_31] : memref<2x!tpu.dma_semaphore, #tpu.memory_space<semaphore_mem>> -> memref<1x!tpu.dma_semaphore, #tpu.memory_space<semaphore_mem>>
      %51 = tpu.memref_squeeze %50 : memref<1x!tpu.dma_semaphore, #tpu.memory_space<semaphore_mem>> -> memref<!tpu.dma_semaphore, #tpu.memory_space<semaphore_mem>>
      tpu.enqueue_dma source(%47 : memref<128xf32, #tpu.memory_space<any>>) target(%49 : memref<128xf32, #tpu.memory_space<vmem>>) target_semaphore(%51 : memref<!tpu.dma_semaphore, #tpu.memory_space<semaphore_mem>>)
      %c3_i32 = arith.constant 3 : i32
      %52 = arith.addi %24, %c3_i32 : i32
      %53 = arith.index_cast %52 : i32 to index
      %54 = memref.load %arg1[%53] : memref<8xi32, #tpu.memory_space<smem>>
      %c0_i32_34 = arith.constant 0 : i32
      %c3_i32_35 = arith.constant 3 : i32
      %c0_i32_36 = arith.constant 0 : i32
      %c0_i32_37 = arith.constant 0 : i32
      %55 = tpu.memref_slice %arg4[%54, %c0_i32_37] : memref<96x128xf32, #tpu.memory_space<any>> -> memref<1x128xf32, #tpu.memory_space<any>>
      %56 = tpu.memref_squeeze %55 : memref<1x128xf32, #tpu.memory_space<any>> -> memref<128xf32, #tpu.memory_space<any>>
      %c0_i32_38 = arith.constant 0 : i32
      %57 = tpu.memref_slice %arg6[%c0_i32_34, %c3_i32_35, %c0_i32_38] : memref<2x8x128xf32, #tpu.memory_space<vmem>> -> memref<1x1x128xf32, #tpu.memory_space<vmem>>
      %58 = tpu.memref_squeeze %57 : memref<1x1x128xf32, #tpu.memory_space<vmem>> -> memref<128xf32, #tpu.memory_space<vmem>>
      %59 = tpu.memref_slice %arg7[%c0_i32_36] : memref<2x!tpu.dma_semaphore, #tpu.memory_space<semaphore_mem>> -> memref<1x!tpu.dma_semaphore, #tpu.memory_space<semaphore_mem>>
      %60 = tpu.memref_squeeze %59 : memref<1x!tpu.dma_semaphore, #tpu.memory_space<semaphore_mem>> -> memref<!tpu.dma_semaphore, #tpu.memory_space<semaphore_mem>>
      tpu.enqueue_dma source(%56 : memref<128xf32, #tpu.memory_space<any>>) target(%58 : memref<128xf32, #tpu.memory_space<vmem>>) target_semaphore(%60 : memref<!tpu.dma_semaphore, #tpu.memory_space<semaphore_mem>>)
      %c4_i32 = arith.constant 4 : i32
      %61 = arith.addi %24, %c4_i32 : i32
      %62 = arith.index_cast %61 : i32 to index
      %63 = memref.load %arg1[%62] : memref<8xi32, #tpu.memory_space<smem>>
      %c0_i32_39 = arith.constant 0 : i32
      %c4_i32_40 = arith.constant 4 : i32
      %c0_i32_41 = arith.constant 0 : i32
      %c0_i32_42 = arith.constant 0 : i32
      %64 = tpu.memref_slice %arg4[%63, %c0_i32_42] : memref<96x128xf32, #tpu.memory_space<any>> -> memref<1x128xf32, #tpu.memory_space<any>>
      %65 = tpu.memref_squeeze %64 : memref<1x128xf32, #tpu.memory_space<any>> -> memref<128xf32, #tpu.memory_space<any>>
      %c0_i32_43 = arith.constant 0 : i32
      %66 = tpu.memref_slice %arg6[%c0_i32_39, %c4_i32_40, %c0_i32_43] : memref<2x8x128xf32, #tpu.memory_space<vmem>> -> memref<1x1x128xf32, #tpu.memory_space<vmem>>
      %67 = tpu.memref_squeeze %66 : memref<1x1x128xf32, #tpu.memory_space<vmem>> -> memref<128xf32, #tpu.memory_space<vmem>>
      %68 = tpu.memref_slice %arg7[%c0_i32_41] : memref<2x!tpu.dma_semaphore, #tpu.memory_space<semaphore_mem>> -> memref<1x!tpu.dma_semaphore, #tpu.memory_space<semaphore_mem>>
      %69 = tpu.memref_squeeze %68 : memref<1x!tpu.dma_semaphore, #tpu.memory_space<semaphore_mem>> -> memref<!tpu.dma_semaphore, #tpu.memory_space<semaphore_mem>>
      tpu.enqueue_dma source(%65 : memref<128xf32, #tpu.memory_space<any>>) target(%67 : memref<128xf32, #tpu.memory_space<vmem>>) target_semaphore(%69 : memref<!tpu.dma_semaphore, #tpu.memory_space<semaphore_mem>>)
      %c5_i32 = arith.constant 5 : i32
      %70 = arith.addi %24, %c5_i32 : i32
      %71 = arith.index_cast %70 : i32 to index
      %72 = memref.load %arg1[%71] : memref<8xi32, #tpu.memory_space<smem>>
      %c0_i32_44 = arith.constant 0 : i32
      %c5_i32_45 = arith.constant 5 : i32
      %c0_i32_46 = arith.constant 0 : i32
      %c0_i32_47 = arith.constant 0 : i32
      %73 = tpu.memref_slice %arg4[%72, %c0_i32_47] : memref<96x128xf32, #tpu.memory_space<any>> -> memref<1x128xf32, #tpu.memory_space<any>>
      %74 = tpu.memref_squeeze %73 : memref<1x128xf32, #tpu.memory_space<any>> -> memref<128xf32, #tpu.memory_space<any>>
      %c0_i32_48 = arith.constant 0 : i32
      %75 = tpu.memref_slice %arg6[%c0_i32_44, %c5_i32_45, %c0_i32_48] : memref<2x8x128xf32, #tpu.memory_space<vmem>> -> memref<1x1x128xf32, #tpu.memory_space<vmem>>
      %76 = tpu.memref_squeeze %75 : memref<1x1x128xf32, #tpu.memory_space<vmem>> -> memref<128xf32, #tpu.memory_space<vmem>>
      %77 = tpu.memref_slice %arg7[%c0_i32_46] : memref<2x!tpu.dma_semaphore, #tpu.memory_space<semaphore_mem>> -> memref<1x!tpu.dma_semaphore, #tpu.memory_space<semaphore_mem>>
      %78 = tpu.memref_squeeze %77 : memref<1x!tpu.dma_semaphore, #tpu.memory_space<semaphore_mem>> -> memref<!tpu.dma_semaphore, #tpu.memory_space<semaphore_mem>>
      tpu.enqueue_dma source(%74 : memref<128xf32, #tpu.memory_space<any>>) target(%76 : memref<128xf32, #tpu.memory_space<vmem>>) target_semaphore(%78 : memref<!tpu.dma_semaphore, #tpu.memory_space<semaphore_mem>>)
      %c6_i32 = arith.constant 6 : i32
      %79 = arith.addi %24, %c6_i32 : i32
      %80 = arith.index_cast %79 : i32 to index
      %81 = memref.load %arg1[%80] : memref<8xi32, #tpu.memory_space<smem>>
      %c0_i32_49 = arith.constant 0 : i32
      %c6_i32_50 = arith.constant 6 : i32
      %c0_i32_51 = arith.constant 0 : i32
      %c0_i32_52 = arith.constant 0 : i32
      %82 = tpu.memref_slice %arg4[%81, %c0_i32_52] : memref<96x128xf32, #tpu.memory_space<any>> -> memref<1x128xf32, #tpu.memory_space<any>>
      %83 = tpu.memref_squeeze %82 : memref<1x128xf32, #tpu.memory_space<any>> -> memref<128xf32, #tpu.memory_space<any>>
      %c0_i32_53 = arith.constant 0 : i32
      %84 = tpu.memref_slice %arg6[%c0_i32_49, %c6_i32_50, %c0_i32_53] : memref<2x8x128xf32, #tpu.memory_space<vmem>> -> memref<1x1x128xf32, #tpu.memory_space<vmem>>
      %85 = tpu.memref_squeeze %84 : memref<1x1x128xf32, #tpu.memory_space<vmem>> -> memref<128xf32, #tpu.memory_space<vmem>>
      %86 = tpu.memref_slice %arg7[%c0_i32_51] : memref<2x!tpu.dma_semaphore, #tpu.memory_space<semaphore_mem>> -> memref<1x!tpu.dma_semaphore, #tpu.memory_space<semaphore_mem>>
      %87 = tpu.memref_squeeze %86 : memref<1x!tpu.dma_semaphore, #tpu.memory_space<semaphore_mem>> -> memref<!tpu.dma_semaphore, #tpu.memory_space<semaphore_mem>>
      tpu.enqueue_dma source(%83 : memref<128xf32, #tpu.memory_space<any>>) target(%85 : memref<128xf32, #tpu.memory_space<vmem>>) target_semaphore(%87 : memref<!tpu.dma_semaphore, #tpu.memory_space<semaphore_mem>>)
      %c7_i32 = arith.constant 7 : i32
      %88 = arith.addi %24, %c7_i32 : i32
      %89 = arith.index_cast %88 : i32 to index
      %90 = memref.load %arg1[%89] : memref<8xi32, #tpu.memory_space<smem>>
      %c0_i32_54 = arith.constant 0 : i32
      %c7_i32_55 = arith.constant 7 : i32
      %c0_i32_56 = arith.constant 0 : i32
      %c0_i32_57 = arith.constant 0 : i32
      %91 = tpu.memref_slice %arg4[%90, %c0_i32_57] : memref<96x128xf32, #tpu.memory_space<any>> -> memref<1x128xf32, #tpu.memory_space<any>>
      %92 = tpu.memref_squeeze %91 : memref<1x128xf32, #tpu.memory_space<any>> -> memref<128xf32, #tpu.memory_space<any>>
      %c0_i32_58 = arith.constant 0 : i32
      %93 = tpu.memref_slice %arg6[%c0_i32_54, %c7_i32_55, %c0_i32_58] : memref<2x8x128xf32, #tpu.memory_space<vmem>> -> memref<1x1x128xf32, #tpu.memory_space<vmem>>
      %94 = tpu.memref_squeeze %93 : memref<1x1x128xf32, #tpu.memory_space<vmem>> -> memref<128xf32, #tpu.memory_space<vmem>>
      %95 = tpu.memref_slice %arg7[%c0_i32_56] : memref<2x!tpu.dma_semaphore, #tpu.memory_space<semaphore_mem>> -> memref<1x!tpu.dma_semaphore, #tpu.memory_space<semaphore_mem>>
      %96 = tpu.memref_squeeze %95 : memref<1x!tpu.dma_semaphore, #tpu.memory_space<semaphore_mem>> -> memref<!tpu.dma_semaphore, #tpu.memory_space<semaphore_mem>>
      tpu.enqueue_dma source(%92 : memref<128xf32, #tpu.memory_space<any>>) target(%94 : memref<128xf32, #tpu.memory_space<vmem>>) target_semaphore(%96 : memref<!tpu.dma_semaphore, #tpu.memory_space<semaphore_mem>>)
    } else {
    }
    %8 = arith.subi %2, %0 : i32
    %c0_i32_3 = arith.constant 0 : i32
    %9 = arith.subi %8, %c0_i32_3 : i32
    %c1_i32_4 = arith.constant 1 : i32
    %c1_i32_5 = arith.constant 1 : i32
    %10 = arith.subi %c1_i32_4, %c1_i32_5 : i32
    %11 = arith.addi %9, %10 : i32
    %c1_i32_6 = arith.constant 1 : i32
    %12 = arith.divsi %11, %c1_i32_6 : i32
    %c1_i32_7 = arith.constant 1 : i32
    %c0_i32_8 = arith.constant 0 : i32
    %c0_i32_9 = arith.constant 0 : i32
    %13 = arith.subi %12, %c0_i32_9 : i32
    %14 = arith.addi %c0_i32_9, %13 : i32
    %c1_i32_10 = arith.constant 1 : i32
    scf.for %arg9 = %c0_i32_9 to %14 step %c1_i32_10  : i32 {
      %24 = arith.muli %arg9, %c1_i32_7 : i32
      %25 = arith.addi %c0_i32_8, %24 : i32
      %26 = arith.addi %0, %25 : i32
      %c1_i32_17 = arith.constant 1 : i32
      %27 = arith.andi %25, %c1_i32_17 : i32
      %c1_i32_18 = arith.constant 1 : i32
      %28 = arith.addi %26, %c1_i32_18 : i32
      %29 = arith.cmpi slt, %28, %2 : i32
      %30 = arith.extui %29 : i1 to i32
      %c0_i32_19 = arith.constant 0 : i32
      %31 = arith.cmpi ne, %30, %c0_i32_19 : i32
      scf.if %31 {
        %c1_i32_57 = arith.constant 1 : i32
        %106 = arith.addi %26, %c1_i32_57 : i32
        %c1_i32_58 = arith.constant 1 : i32
        %107 = arith.subi %c1_i32_58, %27 : i32
        %c8_i32_59 = arith.constant 8 : i32
        %108 = arith.muli %106, %c8_i32_59 : i32
        %c0_i32_60 = arith.constant 0 : i32
        %109 = arith.addi %108, %c0_i32_60 : i32
        %110 = arith.index_cast %109 : i32 to index
        %111 = memref.load %arg1[%110] : memref<8xi32, #tpu.memory_space<smem>>
        %c0_i32_61 = arith.constant 0 : i32
        %c0_i32_62 = arith.constant 0 : i32
        %112 = tpu.memref_slice %arg4[%111, %c0_i32_62] : memref<96x128xf32, #tpu.memory_space<any>> -> memref<1x128xf32, #tpu.memory_space<any>>
        %113 = tpu.memref_squeeze %112 : memref<1x128xf32, #tpu.memory_space<any>> -> memref<128xf32, #tpu.memory_space<any>>
        %c0_i32_63 = arith.constant 0 : i32
        %114 = tpu.memref_slice %arg6[%107, %c0_i32_61, %c0_i32_63] : memref<2x8x128xf32, #tpu.memory_space<vmem>> -> memref<1x1x128xf32, #tpu.memory_space<vmem>>
        %115 = tpu.memref_squeeze %114 : memref<1x1x128xf32, #tpu.memory_space<vmem>> -> memref<128xf32, #tpu.memory_space<vmem>>
        %116 = tpu.memref_slice %arg7[%107] : memref<2x!tpu.dma_semaphore, #tpu.memory_space<semaphore_mem>> -> memref<1x!tpu.dma_semaphore, #tpu.memory_space<semaphore_mem>>
        %117 = tpu.memref_squeeze %116 : memref<1x!tpu.dma_semaphore, #tpu.memory_space<semaphore_mem>> -> memref<!tpu.dma_semaphore, #tpu.memory_space<semaphore_mem>>
        tpu.enqueue_dma source(%113 : memref<128xf32, #tpu.memory_space<any>>) target(%115 : memref<128xf32, #tpu.memory_space<vmem>>) target_semaphore(%117 : memref<!tpu.dma_semaphore, #tpu.memory_space<semaphore_mem>>)
        %c1_i32_64 = arith.constant 1 : i32
        %118 = arith.addi %108, %c1_i32_64 : i32
        %119 = arith.index_cast %118 : i32 to index
        %120 = memref.load %arg1[%119] : memref<8xi32, #tpu.memory_space<smem>>
        %c1_i32_65 = arith.constant 1 : i32
        %c0_i32_66 = arith.constant 0 : i32
        %121 = tpu.memref_slice %arg4[%120, %c0_i32_66] : memref<96x128xf32, #tpu.memory_space<any>> -> memref<1x128xf32, #tpu.memory_space<any>>
        %122 = tpu.memref_squeeze %121 : memref<1x128xf32, #tpu.memory_space<any>> -> memref<128xf32, #tpu.memory_space<any>>
        %c0_i32_67 = arith.constant 0 : i32
        %123 = tpu.memref_slice %arg6[%107, %c1_i32_65, %c0_i32_67] : memref<2x8x128xf32, #tpu.memory_space<vmem>> -> memref<1x1x128xf32, #tpu.memory_space<vmem>>
        %124 = tpu.memref_squeeze %123 : memref<1x1x128xf32, #tpu.memory_space<vmem>> -> memref<128xf32, #tpu.memory_space<vmem>>
        %125 = tpu.memref_slice %arg7[%107] : memref<2x!tpu.dma_semaphore, #tpu.memory_space<semaphore_mem>> -> memref<1x!tpu.dma_semaphore, #tpu.memory_space<semaphore_mem>>
        %126 = tpu.memref_squeeze %125 : memref<1x!tpu.dma_semaphore, #tpu.memory_space<semaphore_mem>> -> memref<!tpu.dma_semaphore, #tpu.memory_space<semaphore_mem>>
        tpu.enqueue_dma source(%122 : memref<128xf32, #tpu.memory_space<any>>) target(%124 : memref<128xf32, #tpu.memory_space<vmem>>) target_semaphore(%126 : memref<!tpu.dma_semaphore, #tpu.memory_space<semaphore_mem>>)
        %c2_i32_68 = arith.constant 2 : i32
        %127 = arith.addi %108, %c2_i32_68 : i32
        %128 = arith.index_cast %127 : i32 to index
        %129 = memref.load %arg1[%128] : memref<8xi32, #tpu.memory_space<smem>>
        %c2_i32_69 = arith.constant 2 : i32
        %c0_i32_70 = arith.constant 0 : i32
        %130 = tpu.memref_slice %arg4[%129, %c0_i32_70] : memref<96x128xf32, #tpu.memory_space<any>> -> memref<1x128xf32, #tpu.memory_space<any>>
        %131 = tpu.memref_squeeze %130 : memref<1x128xf32, #tpu.memory_space<any>> -> memref<128xf32, #tpu.memory_space<any>>
        %c0_i32_71 = arith.constant 0 : i32
        %132 = tpu.memref_slice %arg6[%107, %c2_i32_69, %c0_i32_71] : memref<2x8x128xf32, #tpu.memory_space<vmem>> -> memref<1x1x128xf32, #tpu.memory_space<vmem>>
        %133 = tpu.memref_squeeze %132 : memref<1x1x128xf32, #tpu.memory_space<vmem>> -> memref<128xf32, #tpu.memory_space<vmem>>
        %134 = tpu.memref_slice %arg7[%107] : memref<2x!tpu.dma_semaphore, #tpu.memory_space<semaphore_mem>> -> memref<1x!tpu.dma_semaphore, #tpu.memory_space<semaphore_mem>>
        %135 = tpu.memref_squeeze %134 : memref<1x!tpu.dma_semaphore, #tpu.memory_space<semaphore_mem>> -> memref<!tpu.dma_semaphore, #tpu.memory_space<semaphore_mem>>
        tpu.enqueue_dma source(%131 : memref<128xf32, #tpu.memory_space<any>>) target(%133 : memref<128xf32, #tpu.memory_space<vmem>>) target_semaphore(%135 : memref<!tpu.dma_semaphore, #tpu.memory_space<semaphore_mem>>)
        %c3_i32_72 = arith.constant 3 : i32
        %136 = arith.addi %108, %c3_i32_72 : i32
        %137 = arith.index_cast %136 : i32 to index
        %138 = memref.load %arg1[%137] : memref<8xi32, #tpu.memory_space<smem>>
        %c3_i32_73 = arith.constant 3 : i32
        %c0_i32_74 = arith.constant 0 : i32
        %139 = tpu.memref_slice %arg4[%138, %c0_i32_74] : memref<96x128xf32, #tpu.memory_space<any>> -> memref<1x128xf32, #tpu.memory_space<any>>
        %140 = tpu.memref_squeeze %139 : memref<1x128xf32, #tpu.memory_space<any>> -> memref<128xf32, #tpu.memory_space<any>>
        %c0_i32_75 = arith.constant 0 : i32
        %141 = tpu.memref_slice %arg6[%107, %c3_i32_73, %c0_i32_75] : memref<2x8x128xf32, #tpu.memory_space<vmem>> -> memref<1x1x128xf32, #tpu.memory_space<vmem>>
        %142 = tpu.memref_squeeze %141 : memref<1x1x128xf32, #tpu.memory_space<vmem>> -> memref<128xf32, #tpu.memory_space<vmem>>
        %143 = tpu.memref_slice %arg7[%107] : memref<2x!tpu.dma_semaphore, #tpu.memory_space<semaphore_mem>> -> memref<1x!tpu.dma_semaphore, #tpu.memory_space<semaphore_mem>>
        %144 = tpu.memref_squeeze %143 : memref<1x!tpu.dma_semaphore, #tpu.memory_space<semaphore_mem>> -> memref<!tpu.dma_semaphore, #tpu.memory_space<semaphore_mem>>
        tpu.enqueue_dma source(%140 : memref<128xf32, #tpu.memory_space<any>>) target(%142 : memref<128xf32, #tpu.memory_space<vmem>>) target_semaphore(%144 : memref<!tpu.dma_semaphore, #tpu.memory_space<semaphore_mem>>)
        %c4_i32_76 = arith.constant 4 : i32
        %145 = arith.addi %108, %c4_i32_76 : i32
        %146 = arith.index_cast %145 : i32 to index
        %147 = memref.load %arg1[%146] : memref<8xi32, #tpu.memory_space<smem>>
        %c4_i32_77 = arith.constant 4 : i32
        %c0_i32_78 = arith.constant 0 : i32
        %148 = tpu.memref_slice %arg4[%147, %c0_i32_78] : memref<96x128xf32, #tpu.memory_space<any>> -> memref<1x128xf32, #tpu.memory_space<any>>
        %149 = tpu.memref_squeeze %148 : memref<1x128xf32, #tpu.memory_space<any>> -> memref<128xf32, #tpu.memory_space<any>>
        %c0_i32_79 = arith.constant 0 : i32
        %150 = tpu.memref_slice %arg6[%107, %c4_i32_77, %c0_i32_79] : memref<2x8x128xf32, #tpu.memory_space<vmem>> -> memref<1x1x128xf32, #tpu.memory_space<vmem>>
        %151 = tpu.memref_squeeze %150 : memref<1x1x128xf32, #tpu.memory_space<vmem>> -> memref<128xf32, #tpu.memory_space<vmem>>
        %152 = tpu.memref_slice %arg7[%107] : memref<2x!tpu.dma_semaphore, #tpu.memory_space<semaphore_mem>> -> memref<1x!tpu.dma_semaphore, #tpu.memory_space<semaphore_mem>>
        %153 = tpu.memref_squeeze %152 : memref<1x!tpu.dma_semaphore, #tpu.memory_space<semaphore_mem>> -> memref<!tpu.dma_semaphore, #tpu.memory_space<semaphore_mem>>
        tpu.enqueue_dma source(%149 : memref<128xf32, #tpu.memory_space<any>>) target(%151 : memref<128xf32, #tpu.memory_space<vmem>>) target_semaphore(%153 : memref<!tpu.dma_semaphore, #tpu.memory_space<semaphore_mem>>)
        %c5_i32_80 = arith.constant 5 : i32
        %154 = arith.addi %108, %c5_i32_80 : i32
        %155 = arith.index_cast %154 : i32 to index
        %156 = memref.load %arg1[%155] : memref<8xi32, #tpu.memory_space<smem>>
        %c5_i32_81 = arith.constant 5 : i32
        %c0_i32_82 = arith.constant 0 : i32
        %157 = tpu.memref_slice %arg4[%156, %c0_i32_82] : memref<96x128xf32, #tpu.memory_space<any>> -> memref<1x128xf32, #tpu.memory_space<any>>
        %158 = tpu.memref_squeeze %157 : memref<1x128xf32, #tpu.memory_space<any>> -> memref<128xf32, #tpu.memory_space<any>>
        %c0_i32_83 = arith.constant 0 : i32
        %159 = tpu.memref_slice %arg6[%107, %c5_i32_81, %c0_i32_83] : memref<2x8x128xf32, #tpu.memory_space<vmem>> -> memref<1x1x128xf32, #tpu.memory_space<vmem>>
        %160 = tpu.memref_squeeze %159 : memref<1x1x128xf32, #tpu.memory_space<vmem>> -> memref<128xf32, #tpu.memory_space<vmem>>
        %161 = tpu.memref_slice %arg7[%107] : memref<2x!tpu.dma_semaphore, #tpu.memory_space<semaphore_mem>> -> memref<1x!tpu.dma_semaphore, #tpu.memory_space<semaphore_mem>>
        %162 = tpu.memref_squeeze %161 : memref<1x!tpu.dma_semaphore, #tpu.memory_space<semaphore_mem>> -> memref<!tpu.dma_semaphore, #tpu.memory_space<semaphore_mem>>
        tpu.enqueue_dma source(%158 : memref<128xf32, #tpu.memory_space<any>>) target(%160 : memref<128xf32, #tpu.memory_space<vmem>>) target_semaphore(%162 : memref<!tpu.dma_semaphore, #tpu.memory_space<semaphore_mem>>)
        %c6_i32_84 = arith.constant 6 : i32
        %163 = arith.addi %108, %c6_i32_84 : i32
        %164 = arith.index_cast %163 : i32 to index
        %165 = memref.load %arg1[%164] : memref<8xi32, #tpu.memory_space<smem>>
        %c6_i32_85 = arith.constant 6 : i32
        %c0_i32_86 = arith.constant 0 : i32
        %166 = tpu.memref_slice %arg4[%165, %c0_i32_86] : memref<96x128xf32, #tpu.memory_space<any>> -> memref<1x128xf32, #tpu.memory_space<any>>
        %167 = tpu.memref_squeeze %166 : memref<1x128xf32, #tpu.memory_space<any>> -> memref<128xf32, #tpu.memory_space<any>>
        %c0_i32_87 = arith.constant 0 : i32
        %168 = tpu.memref_slice %arg6[%107, %c6_i32_85, %c0_i32_87] : memref<2x8x128xf32, #tpu.memory_space<vmem>> -> memref<1x1x128xf32, #tpu.memory_space<vmem>>
        %169 = tpu.memref_squeeze %168 : memref<1x1x128xf32, #tpu.memory_space<vmem>> -> memref<128xf32, #tpu.memory_space<vmem>>
        %170 = tpu.memref_slice %arg7[%107] : memref<2x!tpu.dma_semaphore, #tpu.memory_space<semaphore_mem>> -> memref<1x!tpu.dma_semaphore, #tpu.memory_space<semaphore_mem>>
        %171 = tpu.memref_squeeze %170 : memref<1x!tpu.dma_semaphore, #tpu.memory_space<semaphore_mem>> -> memref<!tpu.dma_semaphore, #tpu.memory_space<semaphore_mem>>
        tpu.enqueue_dma source(%167 : memref<128xf32, #tpu.memory_space<any>>) target(%169 : memref<128xf32, #tpu.memory_space<vmem>>) target_semaphore(%171 : memref<!tpu.dma_semaphore, #tpu.memory_space<semaphore_mem>>)
        %c7_i32_88 = arith.constant 7 : i32
        %172 = arith.addi %108, %c7_i32_88 : i32
        %173 = arith.index_cast %172 : i32 to index
        %174 = memref.load %arg1[%173] : memref<8xi32, #tpu.memory_space<smem>>
        %c7_i32_89 = arith.constant 7 : i32
        %c0_i32_90 = arith.constant 0 : i32
        %175 = tpu.memref_slice %arg4[%174, %c0_i32_90] : memref<96x128xf32, #tpu.memory_space<any>> -> memref<1x128xf32, #tpu.memory_space<any>>
        %176 = tpu.memref_squeeze %175 : memref<1x128xf32, #tpu.memory_space<any>> -> memref<128xf32, #tpu.memory_space<any>>
        %c0_i32_91 = arith.constant 0 : i32
        %177 = tpu.memref_slice %arg6[%107, %c7_i32_89, %c0_i32_91] : memref<2x8x128xf32, #tpu.memory_space<vmem>> -> memref<1x1x128xf32, #tpu.memory_space<vmem>>
        %178 = tpu.memref_squeeze %177 : memref<1x1x128xf32, #tpu.memory_space<vmem>> -> memref<128xf32, #tpu.memory_space<vmem>>
        %179 = tpu.memref_slice %arg7[%107] : memref<2x!tpu.dma_semaphore, #tpu.memory_space<semaphore_mem>> -> memref<1x!tpu.dma_semaphore, #tpu.memory_space<semaphore_mem>>
        %180 = tpu.memref_squeeze %179 : memref<1x!tpu.dma_semaphore, #tpu.memory_space<semaphore_mem>> -> memref<!tpu.dma_semaphore, #tpu.memory_space<semaphore_mem>>
        tpu.enqueue_dma source(%176 : memref<128xf32, #tpu.memory_space<any>>) target(%178 : memref<128xf32, #tpu.memory_space<vmem>>) target_semaphore(%180 : memref<!tpu.dma_semaphore, #tpu.memory_space<semaphore_mem>>)
      } else {
      }
      %c0_i32_20 = arith.constant 0 : i32
      %c0_i32_21 = arith.constant 0 : i32
      %c0_i32_22 = arith.constant 0 : i32
      %32 = tpu.memref_slice %arg4[%c0_i32_20, %c0_i32_22] : memref<96x128xf32, #tpu.memory_space<any>> -> memref<1x128xf32, #tpu.memory_space<any>>
      %33 = tpu.memref_squeeze %32 : memref<1x128xf32, #tpu.memory_space<any>> -> memref<128xf32, #tpu.memory_space<any>>
      %c0_i32_23 = arith.constant 0 : i32
      %34 = tpu.memref_slice %arg6[%27, %c0_i32_21, %c0_i32_23] : memref<2x8x128xf32, #tpu.memory_space<vmem>> -> memref<1x1x128xf32, #tpu.memory_space<vmem>>
      %35 = tpu.memref_squeeze %34 : memref<1x1x128xf32, #tpu.memory_space<vmem>> -> memref<128xf32, #tpu.memory_space<vmem>>
      %36 = tpu.memref_slice %arg7[%27] : memref<2x!tpu.dma_semaphore, #tpu.memory_space<semaphore_mem>> -> memref<1x!tpu.dma_semaphore, #tpu.memory_space<semaphore_mem>>
      %37 = tpu.memref_squeeze %36 : memref<1x!tpu.dma_semaphore, #tpu.memory_space<semaphore_mem>> -> memref<!tpu.dma_semaphore, #tpu.memory_space<semaphore_mem>>
      tpu.wait_dma2 semaphore(%37 : memref<!tpu.dma_semaphore, #tpu.memory_space<semaphore_mem>>) src(%33 : memref<128xf32, #tpu.memory_space<any>>) dst(%35 : memref<128xf32, #tpu.memory_space<vmem>>)
      %c0_i32_24 = arith.constant 0 : i32
      %c1_i32_25 = arith.constant 1 : i32
      %c0_i32_26 = arith.constant 0 : i32
      %38 = tpu.memref_slice %arg4[%c0_i32_24, %c0_i32_26] : memref<96x128xf32, #tpu.memory_space<any>> -> memref<1x128xf32, #tpu.memory_space<any>>
      %39 = tpu.memref_squeeze %38 : memref<1x128xf32, #tpu.memory_space<any>> -> memref<128xf32, #tpu.memory_space<any>>
      %c0_i32_27 = arith.constant 0 : i32
      %40 = tpu.memref_slice %arg6[%27, %c1_i32_25, %c0_i32_27] : memref<2x8x128xf32, #tpu.memory_space<vmem>> -> memref<1x1x128xf32, #tpu.memory_space<vmem>>
      %41 = tpu.memref_squeeze %40 : memref<1x1x128xf32, #tpu.memory_space<vmem>> -> memref<128xf32, #tpu.memory_space<vmem>>
      %42 = tpu.memref_slice %arg7[%27] : memref<2x!tpu.dma_semaphore, #tpu.memory_space<semaphore_mem>> -> memref<1x!tpu.dma_semaphore, #tpu.memory_space<semaphore_mem>>
      %43 = tpu.memref_squeeze %42 : memref<1x!tpu.dma_semaphore, #tpu.memory_space<semaphore_mem>> -> memref<!tpu.dma_semaphore, #tpu.memory_space<semaphore_mem>>
      tpu.wait_dma2 semaphore(%43 : memref<!tpu.dma_semaphore, #tpu.memory_space<semaphore_mem>>) src(%39 : memref<128xf32, #tpu.memory_space<any>>) dst(%41 : memref<128xf32, #tpu.memory_space<vmem>>)
      %c0_i32_28 = arith.constant 0 : i32
      %c2_i32 = arith.constant 2 : i32
      %c0_i32_29 = arith.constant 0 : i32
      %44 = tpu.memref_slice %arg4[%c0_i32_28, %c0_i32_29] : memref<96x128xf32, #tpu.memory_space<any>> -> memref<1x128xf32, #tpu.memory_space<any>>
      %45 = tpu.memref_squeeze %44 : memref<1x128xf32, #tpu.memory_space<any>> -> memref<128xf32, #tpu.memory_space<any>>
      %c0_i32_30 = arith.constant 0 : i32
      %46 = tpu.memref_slice %arg6[%27, %c2_i32, %c0_i32_30] : memref<2x8x128xf32, #tpu.memory_space<vmem>> -> memref<1x1x128xf32, #tpu.memory_space<vmem>>
      %47 = tpu.memref_squeeze %46 : memref<1x1x128xf32, #tpu.memory_space<vmem>> -> memref<128xf32, #tpu.memory_space<vmem>>
      %48 = tpu.memref_slice %arg7[%27] : memref<2x!tpu.dma_semaphore, #tpu.memory_space<semaphore_mem>> -> memref<1x!tpu.dma_semaphore, #tpu.memory_space<semaphore_mem>>
      %49 = tpu.memref_squeeze %48 : memref<1x!tpu.dma_semaphore, #tpu.memory_space<semaphore_mem>> -> memref<!tpu.dma_semaphore, #tpu.memory_space<semaphore_mem>>
      tpu.wait_dma2 semaphore(%49 : memref<!tpu.dma_semaphore, #tpu.memory_space<semaphore_mem>>) src(%45 : memref<128xf32, #tpu.memory_space<any>>) dst(%47 : memref<128xf32, #tpu.memory_space<vmem>>)
      %c0_i32_31 = arith.constant 0 : i32
      %c3_i32 = arith.constant 3 : i32
      %c0_i32_32 = arith.constant 0 : i32
      %50 = tpu.memref_slice %arg4[%c0_i32_31, %c0_i32_32] : memref<96x128xf32, #tpu.memory_space<any>> -> memref<1x128xf32, #tpu.memory_space<any>>
      %51 = tpu.memref_squeeze %50 : memref<1x128xf32, #tpu.memory_space<any>> -> memref<128xf32, #tpu.memory_space<any>>
      %c0_i32_33 = arith.constant 0 : i32
      %52 = tpu.memref_slice %arg6[%27, %c3_i32, %c0_i32_33] : memref<2x8x128xf32, #tpu.memory_space<vmem>> -> memref<1x1x128xf32, #tpu.memory_space<vmem>>
      %53 = tpu.memref_squeeze %52 : memref<1x1x128xf32, #tpu.memory_space<vmem>> -> memref<128xf32, #tpu.memory_space<vmem>>
      %54 = tpu.memref_slice %arg7[%27] : memref<2x!tpu.dma_semaphore, #tpu.memory_space<semaphore_mem>> -> memref<1x!tpu.dma_semaphore, #tpu.memory_space<semaphore_mem>>
      %55 = tpu.memref_squeeze %54 : memref<1x!tpu.dma_semaphore, #tpu.memory_space<semaphore_mem>> -> memref<!tpu.dma_semaphore, #tpu.memory_space<semaphore_mem>>
      tpu.wait_dma2 semaphore(%55 : memref<!tpu.dma_semaphore, #tpu.memory_space<semaphore_mem>>) src(%51 : memref<128xf32, #tpu.memory_space<any>>) dst(%53 : memref<128xf32, #tpu.memory_space<vmem>>)
      %c0_i32_34 = arith.constant 0 : i32
      %c4_i32 = arith.constant 4 : i32
      %c0_i32_35 = arith.constant 0 : i32
      %56 = tpu.memref_slice %arg4[%c0_i32_34, %c0_i32_35] : memref<96x128xf32, #tpu.memory_space<any>> -> memref<1x128xf32, #tpu.memory_space<any>>
      %57 = tpu.memref_squeeze %56 : memref<1x128xf32, #tpu.memory_space<any>> -> memref<128xf32, #tpu.memory_space<any>>
      %c0_i32_36 = arith.constant 0 : i32
      %58 = tpu.memref_slice %arg6[%27, %c4_i32, %c0_i32_36] : memref<2x8x128xf32, #tpu.memory_space<vmem>> -> memref<1x1x128xf32, #tpu.memory_space<vmem>>
      %59 = tpu.memref_squeeze %58 : memref<1x1x128xf32, #tpu.memory_space<vmem>> -> memref<128xf32, #tpu.memory_space<vmem>>
      %60 = tpu.memref_slice %arg7[%27] : memref<2x!tpu.dma_semaphore, #tpu.memory_space<semaphore_mem>> -> memref<1x!tpu.dma_semaphore, #tpu.memory_space<semaphore_mem>>
      %61 = tpu.memref_squeeze %60 : memref<1x!tpu.dma_semaphore, #tpu.memory_space<semaphore_mem>> -> memref<!tpu.dma_semaphore, #tpu.memory_space<semaphore_mem>>
      tpu.wait_dma2 semaphore(%61 : memref<!tpu.dma_semaphore, #tpu.memory_space<semaphore_mem>>) src(%57 : memref<128xf32, #tpu.memory_space<any>>) dst(%59 : memref<128xf32, #tpu.memory_space<vmem>>)
      %c0_i32_37 = arith.constant 0 : i32
      %c5_i32 = arith.constant 5 : i32
      %c0_i32_38 = arith.constant 0 : i32
      %62 = tpu.memref_slice %arg4[%c0_i32_37, %c0_i32_38] : memref<96x128xf32, #tpu.memory_space<any>> -> memref<1x128xf32, #tpu.memory_space<any>>
      %63 = tpu.memref_squeeze %62 : memref<1x128xf32, #tpu.memory_space<any>> -> memref<128xf32, #tpu.memory_space<any>>
      %c0_i32_39 = arith.constant 0 : i32
      %64 = tpu.memref_slice %arg6[%27, %c5_i32, %c0_i32_39] : memref<2x8x128xf32, #tpu.memory_space<vmem>> -> memref<1x1x128xf32, #tpu.memory_space<vmem>>
      %65 = tpu.memref_squeeze %64 : memref<1x1x128xf32, #tpu.memory_space<vmem>> -> memref<128xf32, #tpu.memory_space<vmem>>
      %66 = tpu.memref_slice %arg7[%27] : memref<2x!tpu.dma_semaphore, #tpu.memory_space<semaphore_mem>> -> memref<1x!tpu.dma_semaphore, #tpu.memory_space<semaphore_mem>>
      %67 = tpu.memref_squeeze %66 : memref<1x!tpu.dma_semaphore, #tpu.memory_space<semaphore_mem>> -> memref<!tpu.dma_semaphore, #tpu.memory_space<semaphore_mem>>
      tpu.wait_dma2 semaphore(%67 : memref<!tpu.dma_semaphore, #tpu.memory_space<semaphore_mem>>) src(%63 : memref<128xf32, #tpu.memory_space<any>>) dst(%65 : memref<128xf32, #tpu.memory_space<vmem>>)
      %c0_i32_40 = arith.constant 0 : i32
      %c6_i32 = arith.constant 6 : i32
      %c0_i32_41 = arith.constant 0 : i32
      %68 = tpu.memref_slice %arg4[%c0_i32_40, %c0_i32_41] : memref<96x128xf32, #tpu.memory_space<any>> -> memref<1x128xf32, #tpu.memory_space<any>>
      %69 = tpu.memref_squeeze %68 : memref<1x128xf32, #tpu.memory_space<any>> -> memref<128xf32, #tpu.memory_space<any>>
      %c0_i32_42 = arith.constant 0 : i32
      %70 = tpu.memref_slice %arg6[%27, %c6_i32, %c0_i32_42] : memref<2x8x128xf32, #tpu.memory_space<vmem>> -> memref<1x1x128xf32, #tpu.memory_space<vmem>>
      %71 = tpu.memref_squeeze %70 : memref<1x1x128xf32, #tpu.memory_space<vmem>> -> memref<128xf32, #tpu.memory_space<vmem>>
      %72 = tpu.memref_slice %arg7[%27] : memref<2x!tpu.dma_semaphore, #tpu.memory_space<semaphore_mem>> -> memref<1x!tpu.dma_semaphore, #tpu.memory_space<semaphore_mem>>
      %73 = tpu.memref_squeeze %72 : memref<1x!tpu.dma_semaphore, #tpu.memory_space<semaphore_mem>> -> memref<!tpu.dma_semaphore, #tpu.memory_space<semaphore_mem>>
      tpu.wait_dma2 semaphore(%73 : memref<!tpu.dma_semaphore, #tpu.memory_space<semaphore_mem>>) src(%69 : memref<128xf32, #tpu.memory_space<any>>) dst(%71 : memref<128xf32, #tpu.memory_space<vmem>>)
      %c0_i32_43 = arith.constant 0 : i32
      %c7_i32 = arith.constant 7 : i32
      %c0_i32_44 = arith.constant 0 : i32
      %74 = tpu.memref_slice %arg4[%c0_i32_43, %c0_i32_44] : memref<96x128xf32, #tpu.memory_space<any>> -> memref<1x128xf32, #tpu.memory_space<any>>
      %75 = tpu.memref_squeeze %74 : memref<1x128xf32, #tpu.memory_space<any>> -> memref<128xf32, #tpu.memory_space<any>>
      %c0_i32_45 = arith.constant 0 : i32
      %76 = tpu.memref_slice %arg6[%27, %c7_i32, %c0_i32_45] : memref<2x8x128xf32, #tpu.memory_space<vmem>> -> memref<1x1x128xf32, #tpu.memory_space<vmem>>
      %77 = tpu.memref_squeeze %76 : memref<1x1x128xf32, #tpu.memory_space<vmem>> -> memref<128xf32, #tpu.memory_space<vmem>>
      %78 = tpu.memref_slice %arg7[%27] : memref<2x!tpu.dma_semaphore, #tpu.memory_space<semaphore_mem>> -> memref<1x!tpu.dma_semaphore, #tpu.memory_space<semaphore_mem>>
      %79 = tpu.memref_squeeze %78 : memref<1x!tpu.dma_semaphore, #tpu.memory_space<semaphore_mem>> -> memref<!tpu.dma_semaphore, #tpu.memory_space<semaphore_mem>>
      tpu.wait_dma2 semaphore(%79 : memref<!tpu.dma_semaphore, #tpu.memory_space<semaphore_mem>>) src(%75 : memref<128xf32, #tpu.memory_space<any>>) dst(%77 : memref<128xf32, #tpu.memory_space<vmem>>)
      %c8_i32 = arith.constant 8 : i32
      %80 = arith.muli %26, %c8_i32 : i32
      %81 = tpu.assume_multiple %80, 8 : i32
      %82 = arith.index_cast %81 : i32 to index
      %c0_46 = arith.constant 0 : index
      %83 = vector.load %arg3[%82, %c0_46] : memref<8x128xf32, #tpu.memory_space<vmem>>, vector<8x128xf32>
      %84 = arith.index_cast %81 : i32 to index
      %c0_47 = arith.constant 0 : index
      %85 = vector.load %arg2[%84, %c0_47] : memref<8x1xf32, #tpu.memory_space<vmem>>, vector<8x1xf32>
      %86 = arith.index_cast %27 : i32 to index
      %c0_48 = arith.constant 0 : index
      %c0_49 = arith.constant 0 : index
      %87 = vector.load %arg6[%86, %c0_48, %c0_49] : memref<2x8x128xf32, #tpu.memory_space<vmem>>, vector<1x8x128xf32>
      %88 = vector.shape_cast %87 : vector<1x8x128xf32> to vector<8x128xf32>
      %cst_50 = arith.constant dense<0xFF800000> : vector<8xf32>
      %89 = vector.multi_reduction <maximumf>, %88, %cst_50 [1] : vector<8x128xf32> to vector<8xf32>
      %90 = vector.shape_cast %89 : vector<8xf32> to vector<8x1xf32>
      %91 = vector.broadcast %90 : vector<8x1xf32> to vector<8x128xf32>
      %92 = arith.subf %88, %91 : vector<8x128xf32>
      %93 = math.exp %92 : vector<8x128xf32>
      %cst_51 = arith.constant dense<0.000000e+00> : vector<8xf32>
      %94 = vector.multi_reduction <add>, %93, %cst_51 [1] : vector<8x128xf32> to vector<8xf32>
      %95 = vector.shape_cast %94 : vector<8xf32> to vector<8x1xf32>
      %96 = math.log %95 : vector<8x1xf32>
      %97 = vector.broadcast %96 : vector<8x1xf32> to vector<8x128xf32>
      %98 = arith.subf %92, %97 : vector<8x128xf32>
      %99 = arith.mulf %83, %98 : vector<8x128xf32>
      %cst_52 = arith.constant dense<0.000000e+00> : vector<8xf32>
      %100 = vector.multi_reduction <add>, %99, %cst_52 [1] : vector<8x128xf32> to vector<8xf32>
      %101 = vector.shape_cast %100 : vector<8xf32> to vector<8x1xf32>
      %c0_53 = arith.constant 0 : index
      %c0_54 = arith.constant 0 : index
      %102 = vector.load %arg8[%c0_53, %c0_54] : memref<8x1xf32, #tpu.memory_space<vmem>>, vector<8x1xf32>
      %103 = arith.mulf %101, %85 : vector<8x1xf32>
      %104 = arith.addf %102, %103 : vector<8x1xf32>
      %c0_55 = arith.constant 0 : index
      %c0_56 = arith.constant 0 : index
      %105 = vector.load %arg8[%c0_55, %c0_56] : memref<8x1xf32, #tpu.memory_space<vmem>>, vector<8x1xf32>
      tpu.vector_store %arg8[%c0_55, %c0_56], %104 {strides = array<i32>} : memref<8x1xf32, #tpu.memory_space<vmem>>, vector<8x1xf32>,
    }
    %cst_11 = arith.constant 0.000000e+00 : f32
    %15 = vector.broadcast %cst_11 : f32 to vector<8x128xf32>
    %c0_12 = arith.constant 0 : index
    %c0_13 = arith.constant 0 : index
    %16 = vector.load %arg8[%c0_12, %c0_13] : memref<8x1xf32, #tpu.memory_space<vmem>>, vector<8x1xf32>
    %17 = vector.shape_cast %16 : vector<8x1xf32> to vector<1x8x1xf32>
    %cst_14 = arith.constant dense<0.000000e+00> : vector<1xf32>
    %18 = vector.multi_reduction <add>, %17, %cst_14 [1, 2] : vector<1x8x1xf32> to vector<1xf32>
    %19 = vector.shape_cast %18 : vector<1xf32> to vector<1x1x1xf32>
    %20 = vector.extract %19[0, 0, 0] : f32 from vector<1x1x1xf32>
    %21 = vector.broadcast %20 : f32 to vector<8x128xf32>
    %22 = arith.addf %15, %21 : vector<8x128xf32>
    %c0_15 = arith.constant 0 : index
    %c0_16 = arith.constant 0 : index
    %23 = vector.load %arg5[%c0_15, %c0_16] : memref<8x128xf32, #tpu.memory_space<vmem>>, vector<8x128xf32>
    tpu.vector_store %arg5[%c0_15, %c0_16], %22 {strides = array<i32>} : memref<8x128xf32, #tpu.memory_space<vmem>>, vector<8x128xf32>,
    return
  }
  func.func @transform_0(%arg0: i32, %arg1: memref<8xi32, #tpu.memory_space<smem>>) -> (i32, i32) {
    %c0_i32 = arith.constant 0 : i32
    %c0_i32_0 = arith.constant 0 : i32
    %c0_i32_1 = arith.constant 0 : i32
    return %c0_i32, %c0_i32_0 : i32, i32
  }
  func.func @transform_1(%arg0: i32, %arg1: memref<8xi32, #tpu.memory_space<smem>>) -> (i32, i32) {
    %c0_i32 = arith.constant 0 : i32
    %c0_i32_0 = arith.constant 0 : i32
    %c0_i32_1 = arith.constant 0 : i32
    return %c0_i32, %c0_i32_0 : i32, i32
  }
  func.func @transform_3(%arg0: i32, %arg1: memref<8xi32, #tpu.memory_space<smem>>) -> (i32, i32) {
    %c0_i32 = arith.constant 0 : i32
    %c0_i32_0 = arith.constant 0 : i32
    return %arg0, %c0_i32 : i32, i32
  }
}

</mosaic_0001>

<bundles_post_ra>
// kernel: rnnt_align_distill_loss.1
= control target key start
LH: loop header
LB: loop body
LE: loop exit
PB: predicated region body
PF: predicated region fallthrough
CT: control target
= control target key end

     0   :  { %s1375_s0 = inlined_call_operand.vmem [shape: s32[8], index: 0, kind: input, shape index: {}]   ;;  %s1376_s1 = inlined_call_operand.vmem [shape: f32[8,1], index: 1, kind: input, shape index: {}]   ;;  %s1377_s2 = inlined_call_operand.vmem [shape: f32[8,128], index: 2, kind: input, shape index: {}]   ;;  %s1378_s3 = inlined_call_operand.vmem [shape: f32[96,128], index: 3, kind: input, shape index: {}]   ;;  %s1379_s4 = inlined_call_operand.vmem [shape: f32[8,128], index: 4, kind: output, shape index: {}]  }
   0x1   :  { %s9_s17 = sshll.u32 %s1375_s0, 4  ;;  %s10_s17 = int_to_ptr.vmem [resolvable:$true] %s9_s17 }
   0x2   :  { %s1203_s18 = scalar_lea.vmem %s10_s17, 16  ;;  %p1208_p1 = scmp.lt.s32.totalorder %s10_s17, %s10_s17 }
   0x3   :  { %p1204_p0 = scmp.ne.s32.totalorder %s10_s17, %s1203_s18  ;;  %p1209_p2 = scmp.lt.s32.totalorder %s1203_s18, %s1203_s18 }
   0x5   :  { %p1210_p3 = por %p1209_p2, %p1208_p1 }
   0x7   :  { %p1211_p4 = pnand %p1210_p3, %p1204_p0 }
   0x9   :  { %1214 = shalt.err (!%p1211_p4)  }
   0xa   :  { %s1227_s19 = smov [#allocation6]  }
   0xb   :  { %12 = dma.vmem_to_smem %s10_s17, 16, %s1227_s19, [#allocation5] }
   0xc   :  { %1219 = dma.done.wait [#allocation5], 16 }
   0xd   :  { %1220 = vsyncadd [#allocation5], 4294967280 }
   0xe   :  { %14 = sfence }
   0xf   :  { %vm22_vm0 = vcmask 7168   ;;  %s29_s20 = sld [smem:[#allocation6]]  ;;  %v1228_v0 = vmov 0.0  }
  0x10   :  { %23 = vst.msk [vmem:[#allocation4] sm:$0xff] %vm22_vm0, %v1228_v0 }
  0x15   :  { %s30_s22 = scalar_lea.vmem %s1378_s3, %s29_s20 }
  0x16   :  { %v49_v1 = vld [vmem:[%s30_s22] sm:$0x1] }
  0x17   :  { %50 = vst [vmem:[#allocation2] sm:$0x1] %v49_v1 }
  0x18   :  { %76 = vsyncadd [#allocation3], 16  ;;  %s1150_s23 = sld [smem:[#allocation6 + $0x1]] }
  0x1e   :  { %s79_s26 = scalar_lea.vmem %s1378_s3, %s1150_s23 }
  0x1f   :  { %v99_v2 = vld [vmem:[%s79_s26] sm:$0x1] }
  0x20   :  { %100 = vst [vmem:[#allocation2 + $0x1] sm:$0x1] %v99_v2 }
  0x21   :  { %126 = vsyncadd [#allocation3], 16  ;;  %s1151_s27 = sld [smem:[#allocation6 + $0x2]] }
  0x27   :  { %s129_s30 = scalar_lea.vmem %s1378_s3, %s1151_s27 }
  0x28   :  { %v149_v3 = vld [vmem:[%s129_s30] sm:$0x1] }
  0x29   :  { %150 = vst [vmem:[#allocation2 + $0x2] sm:$0x1] %v149_v3 }
  0x2a   :  { %176 = vsyncadd [#allocation3], 16  ;;  %s1152_s5 = sld [smem:[#allocation6 + $0x3]] }
  0x30   :  { %s179_s8 = scalar_lea.vmem %s1378_s3, %s1152_s5 }
  0x31   :  { %v199_v4 = vld [vmem:[%s179_s8] sm:$0x1] }
  0x32   :  { %200 = vst [vmem:[#allocation2 + $0x3] sm:$0x1] %v199_v4 }
  0x33   :  { %226 = vsyncadd [#allocation3], 16  ;;  %s1153_s9 = sld [smem:[#allocation6 + $0x4]] }
  0x39   :  { %s229_s12 = scalar_lea.vmem %s1378_s3, %s1153_s9 }
  0x3a   :  { %v249_v5 = vld [vmem:[%s229_s12] sm:$0x1] }
  0x3b   :  { %250 = vst [vmem:[#allocation2 + $0x4] sm:$0x1] %v249_v5 }
  0x3c   :  { %276 = vsyncadd [#allocation3], 16  ;;  %s1154_s13 = sld [smem:[#allocation6 + $0x5]] }
  0x42   :  { %s279_s16 = scalar_lea.vmem %s1378_s3, %s1154_s13 }
  0x43   :  { %v299_v6 = vld [vmem:[%s279_s16] sm:$0x1] }
  0x44   :  { %300 = vst [vmem:[#allocation2 + $0x5] sm:$0x1] %v299_v6 }
  0x45   :  { %326 = vsyncadd [#allocation3], 16  ;;  %s1155_s17 = sld [smem:[#allocation6 + $0x6]] }
  0x4b   :  { %s329_s20 = scalar_lea.vmem %s1378_s3, %s1155_s17 }
  0x4c   :  { %v349_v7 = vld [vmem:[%s329_s20] sm:$0x1] }
  0x4d   :  { %350 = vst [vmem:[#allocation2 + $0x6] sm:$0x1] %v349_v7 }
  0x4e   :  { %376 = vsyncadd [#allocation3], 16  ;;  %s1156_s21 = sld [smem:[#allocation6 + $0x7]] }
  0x54   :  { %s379_s23 = scalar_lea.vmem %s1378_s3, %s1156_s21 }
  0x55   :  { %v399_v8 = vld [vmem:[%s379_s23] sm:$0x1] }
  0x56   :  { %400 = vst [vmem:[#allocation2 + $0x7] sm:$0x1] %v399_v8 }
  0x57   :  { %426 = vsyncadd [#allocation3], 16  ;;  %s1282_s24 = smov 0  }
  0x58 LB: > { %s1288_s25 = sand.u32 1, %s1225_s24  ;;  %s436_s26 = sadd.s32 1, %s1225_s24   ;;  %s1225_s24 = sphi %s1282_s24, %s1381_s24  }
  0x59   : > { %p1293_p5 = scmp.ge.s32.totalorder %s436_s26, 1 }
  0x5a   : > { %s1185_s28 = sshll.u32 (!%p1293_p5), %s1225_s24, 3  ;;  %s441_s29 = ssub.s32 (!%p1293_p5), 1, %s1288_s25 }
  0x5b   : > { %440 = sbr.rel (%p1293_p5) target bundleno = 172 (0xac), region = 264  ;;  %s1301_s30 = sadd.s32 (!%p1293_p5), 8, %s1185_s28 }
  0x5c   : > { %s443_s5 = sld [smem:[#allocation6 + %s1301_s30]] (!%p1293_p5)  ;;  %s1159_s6 = sshll.u32 (!%p1293_p5), %s441_s29, 3 }
  0x5d   : > { %s1307_s10 = scalar_lea.vmem (!%p1293_p5), [#allocation2], %s1159_s6  ;;  %s1310_s11 = scalar_lea.sflag (!%p1293_p5), [#allocation3], %s441_s29 }
  0x62   : > { %s444_s9 = scalar_lea.vmem %s1378_s3, %s443_s5 }
  0x63   : > { %v466_v9 = vld [vmem:[%s444_s9] sm:$0x1] }
  0x64   : > { %467 = vst [vmem:[%s1307_s10] sm:$0x1] %v466_v9 }
  0x65   : > { %493 = vsyncadd %s1310_s11, 16  ;;  %s494_s12 = sadd.s32 1, %s1301_s30 }
  0x66   : > { %s495_s13 = sld [smem:[#allocation6 + %s494_s12]] }
  0x6c   : > { %s496_s16 = scalar_lea.vmem %s1378_s3, %s495_s13 }
  0x6d   : > { %v517_v10 = vld [vmem:[%s496_s16] sm:$0x1] }
  0x6e   : > { %1162 = vst [vmem:[%s1307_s10 + $0x1] sm:$0x1] %v517_v10 }
  0x6f   : > { %544 = vsyncadd %s1310_s11, 16  ;;  %s545_s17 = sadd.s32 2, %s1301_s30 }
  0x70   : > { %s546_s18 = sld [smem:[#allocation6 + %s545_s17]] }
  0x76   : > { %s547_s21 = scalar_lea.vmem %s1378_s3, %s546_s18 }
  0x77   : > { %v568_v11 = vld [vmem:[%s547_s21] sm:$0x1] }
  0x78   : > { %1165 = vst [vmem:[%s1307_s10 + $0x2] sm:$0x1] %v568_v11 }
  0x79   : > { %595 = vsyncadd %s1310_s11, 16  ;;  %s596_s0 = sadd.s32 3, %s1301_s30 }
  0x7a   : > { %s597_s22 = sld [smem:[#allocation6 + %s596_s0]] }
  0x80   : > { %s598_s29 = scalar_lea.vmem %s1378_s3, %s597_s22 }
  0x81   : > { %v619_v12 = vld [vmem:[%s598_s29] sm:$0x1] }
  0x82   : > { %1168 = vst [vmem:[%s1307_s10 + $0x3] sm:$0x1] %v619_v12 }
  0x83   : > { %646 = vsyncadd %s1310_s11, 16  ;;  %s647_s5 = sadd.s32 4, %s1301_s30 }
  0x84   : > { %s648_s6 = sld [smem:[#allocation6 + %s647_s5]] }
  0x8a   : > { %s649_s9 = scalar_lea.vmem %s1378_s3, %s648_s6 }
  0x8b   : > { %v670_v13 = vld [vmem:[%s649_s9] sm:$0x1] }
  0x8c   : > { %1171 = vst [vmem:[%s1307_s10 + $0x4] sm:$0x1] %v670_v13 }
  0x8d   : > { %697 = vsyncadd %s1310_s11, 16  ;;  %s698_s12 = sadd.s32 5, %s1301_s30 }
  0x8e   : > { %s699_s13 = sld [smem:[#allocation6 + %s698_s12]] }
  0x94   : > { %s700_s16 = scalar_lea.vmem %s1378_s3, %s699_s13 }
  0x95   : > { %v721_v14 = vld [vmem:[%s700_s16] sm:$0x1] }
  0x96   : > { %1174 = vst [vmem:[%s1307_s10 + $0x5] sm:$0x1] %v721_v14 }
  0x97   : > { %748 = vsyncadd %s1310_s11, 16  ;;  %s749_s17 = sadd.s32 6, %s1301_s30 }
  0x98   : > { %s750_s18 = sld [smem:[#allocation6 + %s749_s17]] }
  0x9e   : > { %s751_s21 = scalar_lea.vmem %s1378_s3, %s750_s18 }
  0x9f   : > { %v772_v15 = vld [vmem:[%s751_s21] sm:$0x1] }
  0xa0   : > { %1177 = vst [vmem:[%s1307_s10 + $0x6] sm:$0x1] %v772_v15 }
  0xa1   : > { %799 = vsyncadd %s1310_s11, 16  ;;  %s800_s0 = sadd.s32 7, %s1301_s30 }
  0xa2   : > { %s801_s22 = sld [smem:[#allocation6 + %s800_s0]] }
  0xa8   : > { %s802_s29 = scalar_lea.vmem %s1378_s3, %s801_s22 }
  0xa9   : > { %v823_v16 = vld [vmem:[%s802_s29] sm:$0x1] }
  0xaa   : > { %1180 = vst [vmem:[%s1307_s10 + $0x7] sm:$0x1] %v823_v16 }
  0xab   : > { %850 = vsyncadd %s1310_s11, 16 }
  0xac PF: > { %s851_s5 = scalar_lea.sflag [#allocation3], %s1288_s25 }
  0xad   : > { %1221 = dma.done.wait %s851_s5, 128 }
  0xae   : > { %1222 = vsyncadd %s851_s5, 4294967168  ;;  %s1182_s6 = sshll.u32 %s1288_s25, 3  ;;  %s1181_s30 = sshll.u32 %s1225_s24, 3  ;;  %v889_v29 = vld [vmem:[#allocation4] sm:$0xff] }
  0xaf   : > { %s874_s7 = scalar_lea.vmem [#allocation2], %s1182_s6  ;;  %s869_s8 = scalar_lea.vmem %s1377_s2, %s1181_s30 }
  0xb0   : > { %v870_v25 = vld [vmem:[%s869_s8] sm:$0xff]  ;;  %s871_s12 = scalar_lea.vmem %s1376_s1, %s1181_s30  ;;  %s1381_s24 = smov %s436_s26 }
  0xb1   : > { %v875_v17 = vld [vmem:[%s874_s7] sm:$0xff] }
  0xb2   : > { %876 = vmax.xlane.f32.xlu0 %v875_v17  ;;  %v872_v28 = vld [vmem:[%s871_s12] sm:$0xff] }
 0x13b   : > { %v877_v18 = vpop.xlane.xlu0 %876 }
 0x13c   : > { %v878_v19 = vsub.f32 %v875_v17, %v877_v18 }
 0x13e   : > { %v879_v20 = vmul.f32 1.442695, %v878_v19 }
 0x140   : > { %1199 = vpow2.f32 %v879_v20 }
 0x14d   : > { %v1200_v21 = vpop.eup %1199 }
 0x14e   : > { %881 = vadd.xlane.f32.xlu0 %v1200_v21 }
 0x1d7   : > { %v882_v22 = vpop.xlane.xlu0 %881 }
 0x1d8   : > { %1201 = vlog2.f32 %v882_v22 }
 0x1e5   : > { %v1202_v23 = vpop.eup %1201 }
 0x1e6   : > { %v884_v24 = vmul.f32 0.6931472, %v1202_v23 }
 0x1e8   : > { %v885_v26 = vsub.f32 %v878_v19, %v884_v24 }
 0x1ea   : > { %v886_v27 = vmul.f32 %v885_v26, %v870_v25 }
 0x1ec   : > { %887 = vadd.xlane.f32.xlu1 %v886_v27 }
 0x275   : > { %v888_v30 = vpop.xlane.xlu1 %887 }
 0x276   : > { %v890_v31 = vmul.f32 %v888_v30, %v872_v28  ;;  %433 = sbr.rel (!%p1293_p5) target bundleno = 88 (0x58), region = 720 }
 0x278   : > { %v891_v32 = vadd.f32 %v890_v31, %v889_v29 }
 0x27a   : > { %892 = vst.msk [vmem:[#allocation4] sm:$0xff] %vm22_vm0, %v891_v32 }
 0x281   :  { %v893_v33 = vld [vmem:[#allocation4] sm:$0xff] }
 0x282   :  { %v894_v34 = vsel %vm22_vm0, %v893_v33, 0.0 }
 0x283   :  { %895 = vadd.xlane.f32.xlu0 %v894_v34 }
 0x30c   :  { %v896_v35 = vpop.xlane.xlu0 %895 }
 0x30d   :  { %v897_v36 = vrot.slane %v896_v35, 4 }
 0x30f   :  { %v898_v37 = vadd.f32 %v897_v36, %v896_v35 }
 0x311   :  { %v899_v38 = vrot.slane %v898_v37, 2 }
 0x313   :  { %v900_v39 = vadd.f32 %v899_v38, %v898_v37 }
 0x315   :  { %v901_v40 = vrot.slane %v900_v39, 1 }
 0x317   :  { %v902_v41 = vadd.f32 %v901_v40, %v900_v39 }
 0x319   :  { %1187 = vpush %v902_v41 }
 0x34a   :  { %s1188_s13 = spop %1187 }
 0x34b   :  { %v904_v42 = vstv %s1188_s13 }
 0x34c   :  { %906 = vst [vmem:[%s1379_s4] sm:$0xff] %v904_v42 }
 0x34d   :  { %911 = vsyncmov [#allocation3] }
 0x350   :  { %s912_s26 = vpop.sfrf %911 }
 0x351   :  { %p1183_p6 = scmp.ne.s32.totalorder %s912_s26, 0 }
 0x353   :  { %916 = shalt.err (%p1183_p6)  }
 0x354   :  { %918 = vsyncmov [#allocation3 + $0x1] }
 0x357   :  { %s919_s1 = vpop.sfrf %918 }
 0x358   :  { %p1184_p7 = scmp.ne.s32.totalorder %s919_s1, 0 }
 0x35a   :  { %923 = shalt.err (%p1184_p7)  }

</bundles_post_ra>
